<compile_context>
chip_gen: v5e
topology: v5e:2x2
jax: 0.10.0
libtpu: 0.0.40
codegen_flags: <defaults>
</compile_context>

<pallas_src>
import functools

import jax
import jax.numpy as jnp
from jax.experimental import pallas as pl
from jax.experimental.pallas import tpu as pltpu

NEG_BIG = -9e15


def _gat_fused_kernel(x_ref, wh_aug_ref, adj_ref, wo_aug_ref, out_ref,
                      *, alpha, num_heads, hidden_dim, num_classes):
    """Entire GATModel forward on the TensorCore in one invocation.

    x_ref:      (N, Fin)            node features
    wh_aug_ref: (H, Fin, Fout+2)    per-head weight with [W | W@a1 | W@a2]
    adj_ref:    (N, N)              adjacency (>0 == edge)
    wo_aug_ref: (H*Fout, C+2)       output-layer weight with a1/a2 columns folded in
    out_ref:    (N, C)              log-softmax output
    """
    x = x_ref[...]                                   # (N, Fin)
    edge = adj_ref[...] > 0.0                        # computed once, reused H+1 times

    def attention(wh_aug, fout, apply_elu):
        # wh_aug = [Wh | Wh@a1 | Wh@a2] straight out of the MXU.
        Wh = wh_aug[:, :fout]                        # (N, fout)
        f1 = wh_aug[:, fout:fout + 1]                # (N, 1)
        f2 = wh_aug[:, fout + 1:fout + 2]            # (N, 1)
        e = f1 + f2.T                                # (N, N)

        # fused LeakyReLU + non-edge masking (single nested select, scalar fill)
        e = jnp.where(edge, jnp.where(e > 0, e, alpha * e), NEG_BIG)

        # numerically-stable softmax numerator; normalization deferred past the matmul
        m = jnp.max(e, axis=1, keepdims=True)        # (N, 1)
        p = jnp.exp(e - m)                           # (N, N)
        l = jnp.sum(p, axis=1, keepdims=True)        # (N, 1)

        hp = jnp.dot(p, Wh, preferred_element_type=jnp.float32)   # (N, fout)
        hp = hp * pl.reciprocal(l)                   # exact; O(N*fout) scale

        if apply_elu:
            hp = jnp.where(hp > 0, hp, jnp.exp(hp) - 1.0)
        return hp

    # -------- attention heads (concat=True) --------
    head_outs = []
    for h in range(num_heads):                       # static unroll, H is tiny
        W_aug = wh_aug_ref[h]                        # (Fin, Fout+2)
        Wh_aug = jnp.dot(x, W_aug, preferred_element_type=jnp.float32)
        head_outs.append(attention(Wh_aug, hidden_dim, apply_elu=True))
    x_cat = jnp.concatenate(head_outs, axis=1)       # (N, H*Fout), stays in VMEM/vregs

    # -------- output layer (concat=False) + model-level elu + log_softmax --------
    Wo_aug = wo_aug_ref[...]                         # (H*Fout, C+2)
    Who_aug = jnp.dot(x_cat, Wo_aug, preferred_element_type=jnp.float32)
    out = attention(Who_aug, num_classes, apply_elu=False)

    out = jnp.where(out > 0, out, jnp.exp(out) - 1.0)              # elu
    mm = jnp.max(out, axis=1, keepdims=True)
    lse = mm + jnp.log(jnp.sum(jnp.exp(out - mm), axis=1, keepdims=True))
    out_ref[...] = out - lse                                       # log_softmax(dim=1)


def _augment_weight(W, a):
    """Append W@a1 and W@a2 as two extra columns so f1/f2 ride the MXU matmul."""
    fout = W.shape[1]
    a1 = a[:fout].reshape(fout, 1)
    a2 = a[fout:].reshape(fout, 1)
    return jnp.concatenate([W, W @ a1, W @ a2], axis=1)            # (Fin, fout+2)


def gat_model_forward(x, adj, params, *, alpha):
    """Forward pass of GATModel (inference -> dropout is identity)."""
    # TODO(synk): training-mode dropout not implemented (identity at inference).
    N, _ = x.shape
    heads = params["heads"]
    H = len(heads)
    Fout = heads[0][0].shape[1]
    W_o, a_o = params["out"]
    C = W_o.shape[1]

    W_heads_aug = jnp.stack(
        [_augment_weight(W, a) for (W, a) in heads], axis=0)       # (H, Fin, Fout+2)
    W_out_aug = _augment_weight(W_o, a_o)                          # (H*Fout, C+2)

    kern = functools.partial(_gat_fused_kernel, alpha=alpha, num_heads=H,
                             hidden_dim=Fout, num_classes=C)
    vmem = pl.BlockSpec(memory_space=pltpu.MemorySpace.VMEM)
    return pl.pallas_call(
        kern,
        out_shape=jax.ShapeDtypeStruct((N, C), jnp.float32),
        in_specs=[vmem] * 4,
        out_specs=vmem,
    )(x.astype(jnp.float32), W_heads_aug.astype(jnp.float32),
      adj.astype(jnp.float32), W_out_aug.astype(jnp.float32))


# ----------------------------- pure-JAX reference -----------------------------
def _ref_layer(h, W, a, adj, *, alpha, concat):
    Fout = W.shape[1]
    Wh = h @ W
    f1 = Wh @ a[:Fout].reshape(Fout, 1)
    f2 = Wh @ a[Fout:].reshape(Fout, 1)
    e = f1 + f2.T
    e = jnp.where(e > 0, e, alpha * e)
    e = jnp.where(adj > 0, e, jnp.full_like(e, NEG_BIG))
    att = jax.nn.softmax(e, axis=1)
    hp = att @ Wh
    return jax.nn.elu(hp) if concat else hp


def _ref_model(x, adj, params, *, alpha):
    hs = [_ref_layer(x, W, a, adj, alpha=alpha, concat=True)
          for (W, a) in params["heads"]]
    xc = jnp.concatenate(hs, axis=1)
    W_o, a_o = params["out"]
    out = jax.nn.elu(_ref_layer(xc, W_o, a_o, adj, alpha=alpha, concat=False))
    return jax.nn.log_softmax(out, axis=1)


# ---------------------------------- main --------------------------------------
if __name__ == "__main__":
    # module hyperparameters
    node_features = 32
    hidden_dim = 16
    num_classes = 8
    num_heads = 2
    alpha = 0.2
    dropout = 0.6  # unused at inference
    N = 16         # number of nodes

    key = jax.random.PRNGKey(0)
    k_x, k_adj, *k_p = jax.random.split(key, 3 + 2 * (num_heads + 1))

    x = jax.random.normal(k_x, (N, node_features), dtype=jnp.float32)

    # deterministic adjacency with self loops (every row has >= 1 edge)
    adj = (jax.random.uniform(k_adj, (N, N)) < 0.3).astype(jnp.float32)
    adj = jnp.maximum(adj, jnp.eye(N, dtype=jnp.float32))

    def xavier(k, shape):
        fan_in, fan_out = shape[0], shape[-1]
        g = jnp.sqrt(6.0 / (fan_in + fan_out))
        return jax.random.uniform(k, shape, jnp.float32, -g, g)

    params = {
        "heads": [
            (xavier(k_p[2 * i], (node_features, hidden_dim)),
             xavier(k_p[2 * i + 1], (2 * hidden_dim,)))
            for i in range(num_heads)
        ],
        "out": (xavier(k_p[2 * num_heads], (hidden_dim * num_heads, num_classes)),
                xavier(k_p[2 * num_heads + 1], (2 * num_classes,))),
    }

    out = gat_model_forward(x, adj, params, alpha=alpha)
    out = jax.block_until_ready(out)

    ref = _ref_model(x, adj, params, alpha=alpha)
    assert out.shape == (N, num_classes)
    assert jnp.allclose(out, ref, atol=1e-4, rtol=1e-4), "mismatch vs reference"

    print("KERNEL_OK")
</pallas_src>

<mosaic_0001>
module attributes {stable_mosaic.version = 11 : i64} {
  func.func @_gat_fused_kernel(%arg0: memref<16x32xf32, #tpu.memory_space<vmem>>, %arg1: memref<2x32x18xf32, #tpu.memory_space<vmem>>, %arg2: memref<16x16xf32, #tpu.memory_space<vmem>>, %arg3: memref<32x10xf32, #tpu.memory_space<vmem>>, %arg4: memref<16x8xf32, #tpu.memory_space<vmem>>) attributes {dimension_semantics = [], scalar_prefetch = 0 : i64, scratch_operands = 0 : i64, tpu.core_type = #tpu.core_type<tc>} {
    %c0 = arith.constant 0 : index
    %c0_0 = arith.constant 0 : index
    %0 = vector.load %arg0[%c0, %c0_0] : memref<16x32xf32, #tpu.memory_space<vmem>>, vector<16x32xf32>
    %c0_1 = arith.constant 0 : index
    %c0_2 = arith.constant 0 : index
    %1 = vector.load %arg2[%c0_1, %c0_2] : memref<16x16xf32, #tpu.memory_space<vmem>>, vector<16x16xf32>
    %cst = arith.constant 0.000000e+00 : f32
    %2 = vector.broadcast %cst : f32 to vector<16x16xf32>
    %3 = arith.cmpf ogt, %1, %2 : vector<16x16xf32>
    %c0_3 = arith.constant 0 : index
    %c0_4 = arith.constant 0 : index
    %c0_5 = arith.constant 0 : index
    %4 = vector.load %arg1[%c0_3, %c0_4, %c0_5] : memref<2x32x18xf32, #tpu.memory_space<vmem>>, vector<1x32x18xf32>
    %5 = vector.shape_cast %4 : vector<1x32x18xf32> to vector<32x18xf32>
    %cst_6 = arith.constant dense<0.000000e+00> : vector<16x18xf32>
    %6 = tpu.matmul %0, %5, %cst_6 {dimension_numbers = #tpu.dot_dimension_numbers<[1], [0], [0], [1], [0, 0, 1, 1], [], []>} : vector<16x32xf32>, vector<32x18xf32>, vector<16x18xf32> -> vector<16x18xf32>
    %7 = vector.extract_strided_slice %6 {offsets = [0, 0], sizes = [16, 16], strides = [1, 1]} : vector<16x18xf32> to vector<16x16xf32>
    %8 = vector.extract_strided_slice %6 {offsets = [0, 16], sizes = [16, 1], strides = [1, 1]} : vector<16x18xf32> to vector<16x1xf32>
    %9 = vector.extract_strided_slice %6 {offsets = [0, 17], sizes = [16, 1], strides = [1, 1]} : vector<16x18xf32> to vector<16x1xf32>
    %10 = tpu.transpose %9, [1, 0] : vector<16x1xf32> -> vector<1x16xf32>
    %11 = vector.broadcast %8 : vector<16x1xf32> to vector<16x16xf32>
    %12 = vector.broadcast %10 : vector<1x16xf32> to vector<16x16xf32>
    %13 = arith.addf %11, %12 : vector<16x16xf32>
    %cst_7 = arith.constant 0.000000e+00 : f32
    %14 = vector.broadcast %cst_7 : f32 to vector<16x16xf32>
    %15 = arith.cmpf ogt, %13, %14 : vector<16x16xf32>
    %cst_8 = arith.constant 2.000000e-01 : f32
    %16 = vector.broadcast %cst_8 : f32 to vector<16x16xf32>
    %17 = arith.mulf %16, %13 : vector<16x16xf32>
    %18 = arith.select %15, %13, %17 : vector<16x16xi1>, vector<16x16xf32>
    %cst_9 = arith.constant -9.000000e+15 : f32
    %19 = vector.broadcast %cst_9 : f32 to vector<16x16xf32>
    %20 = arith.select %3, %18, %19 : vector<16x16xi1>, vector<16x16xf32>
    %cst_10 = arith.constant dense<0xFF800000> : vector<16xf32>
    %21 = vector.multi_reduction <maximumf>, %20, %cst_10 [1] : vector<16x16xf32> to vector<16xf32>
    %22 = vector.shape_cast %21 : vector<16xf32> to vector<16x1xf32>
    %23 = vector.broadcast %22 : vector<16x1xf32> to vector<16x16xf32>
    %24 = arith.subf %20, %23 : vector<16x16xf32>
    %25 = math.exp %24 : vector<16x16xf32>
    %cst_11 = arith.constant dense<0.000000e+00> : vector<16xf32>
    %26 = vector.multi_reduction <add>, %25, %cst_11 [1] : vector<16x16xf32> to vector<16xf32>
    %27 = vector.shape_cast %26 : vector<16xf32> to vector<16x1xf32>
    %cst_12 = arith.constant dense<0.000000e+00> : vector<16x16xf32>
    %28 = tpu.matmul %25, %7, %cst_12 {dimension_numbers = #tpu.dot_dimension_numbers<[1], [0], [0], [1], [0, 0, 1, 1], [], []>} : vector<16x16xf32>, vector<16x16xf32>, vector<16x16xf32> -> vector<16x16xf32>
    %29 = tpu.reciprocal %27 : vector<16x1xf32> -> vector<16x1xf32>
    %30 = vector.broadcast %29 : vector<16x1xf32> to vector<16x16xf32>
    %31 = arith.mulf %28, %30 : vector<16x16xf32>
    %cst_13 = arith.constant 0.000000e+00 : f32
    %32 = vector.broadcast %cst_13 : f32 to vector<16x16xf32>
    %33 = arith.cmpf ogt, %31, %32 : vector<16x16xf32>
    %34 = math.exp %31 : vector<16x16xf32>
    %cst_14 = arith.constant 1.000000e+00 : f32
    %35 = vector.broadcast %cst_14 : f32 to vector<16x16xf32>
    %36 = arith.subf %34, %35 : vector<16x16xf32>
    %37 = arith.select %33, %31, %36 : vector<16x16xi1>, vector<16x16xf32>
    %c1 = arith.constant 1 : index
    %c0_15 = arith.constant 0 : index
    %c0_16 = arith.constant 0 : index
    %38 = vector.load %arg1[%c1, %c0_15, %c0_16] : memref<2x32x18xf32, #tpu.memory_space<vmem>>, vector<1x32x18xf32>
    %39 = vector.shape_cast %38 : vector<1x32x18xf32> to vector<32x18xf32>
    %cst_17 = arith.constant dense<0.000000e+00> : vector<16x18xf32>
    %40 = tpu.matmul %0, %39, %cst_17 {dimension_numbers = #tpu.dot_dimension_numbers<[1], [0], [0], [1], [0, 0, 1, 1], [], []>} : vector<16x32xf32>, vector<32x18xf32>, vector<16x18xf32> -> vector<16x18xf32>
    %41 = vector.extract_strided_slice %40 {offsets = [0, 0], sizes = [16, 16], strides = [1, 1]} : vector<16x18xf32> to vector<16x16xf32>
    %42 = vector.extract_strided_slice %40 {offsets = [0, 16], sizes = [16, 1], strides = [1, 1]} : vector<16x18xf32> to vector<16x1xf32>
    %43 = vector.extract_strided_slice %40 {offsets = [0, 17], sizes = [16, 1], strides = [1, 1]} : vector<16x18xf32> to vector<16x1xf32>
    %44 = tpu.transpose %43, [1, 0] : vector<16x1xf32> -> vector<1x16xf32>
    %45 = vector.broadcast %42 : vector<16x1xf32> to vector<16x16xf32>
    %46 = vector.broadcast %44 : vector<1x16xf32> to vector<16x16xf32>
    %47 = arith.addf %45, %46 : vector<16x16xf32>
    %cst_18 = arith.constant 0.000000e+00 : f32
    %48 = vector.broadcast %cst_18 : f32 to vector<16x16xf32>
    %49 = arith.cmpf ogt, %47, %48 : vector<16x16xf32>
    %cst_19 = arith.constant 2.000000e-01 : f32
    %50 = vector.broadcast %cst_19 : f32 to vector<16x16xf32>
    %51 = arith.mulf %50, %47 : vector<16x16xf32>
    %52 = arith.select %49, %47, %51 : vector<16x16xi1>, vector<16x16xf32>
    %cst_20 = arith.constant -9.000000e+15 : f32
    %53 = vector.broadcast %cst_20 : f32 to vector<16x16xf32>
    %54 = arith.select %3, %52, %53 : vector<16x16xi1>, vector<16x16xf32>
    %cst_21 = arith.constant dense<0xFF800000> : vector<16xf32>
    %55 = vector.multi_reduction <maximumf>, %54, %cst_21 [1] : vector<16x16xf32> to vector<16xf32>
    %56 = vector.shape_cast %55 : vector<16xf32> to vector<16x1xf32>
    %57 = vector.broadcast %56 : vector<16x1xf32> to vector<16x16xf32>
    %58 = arith.subf %54, %57 : vector<16x16xf32>
    %59 = math.exp %58 : vector<16x16xf32>
    %cst_22 = arith.constant dense<0.000000e+00> : vector<16xf32>
    %60 = vector.multi_reduction <add>, %59, %cst_22 [1] : vector<16x16xf32> to vector<16xf32>
    %61 = vector.shape_cast %60 : vector<16xf32> to vector<16x1xf32>
    %cst_23 = arith.constant dense<0.000000e+00> : vector<16x16xf32>
    %62 = tpu.matmul %59, %41, %cst_23 {dimension_numbers = #tpu.dot_dimension_numbers<[1], [0], [0], [1], [0, 0, 1, 1], [], []>} : vector<16x16xf32>, vector<16x16xf32>, vector<16x16xf32> -> vector<16x16xf32>
    %63 = tpu.reciprocal %61 : vector<16x1xf32> -> vector<16x1xf32>
    %64 = vector.broadcast %63 : vector<16x1xf32> to vector<16x16xf32>
    %65 = arith.mulf %62, %64 : vector<16x16xf32>
    %cst_24 = arith.constant 0.000000e+00 : f32
    %66 = vector.broadcast %cst_24 : f32 to vector<16x16xf32>
    %67 = arith.cmpf ogt, %65, %66 : vector<16x16xf32>
    %68 = math.exp %65 : vector<16x16xf32>
    %cst_25 = arith.constant 1.000000e+00 : f32
    %69 = vector.broadcast %cst_25 : f32 to vector<16x16xf32>
    %70 = arith.subf %68, %69 : vector<16x16xf32>
    %71 = arith.select %67, %65, %70 : vector<16x16xi1>, vector<16x16xf32>
    %72 = tpu.concatenate %37, %71 in 1 : vector<16x16xf32>, vector<16x16xf32> -> vector<16x32xf32>
    %c0_26 = arith.constant 0 : index
    %c0_27 = arith.constant 0 : index
    %73 = vector.load %arg3[%c0_26, %c0_27] : memref<32x10xf32, #tpu.memory_space<vmem>>, vector<32x10xf32>
    %cst_28 = arith.constant dense<0.000000e+00> : vector<16x10xf32>
    %74 = tpu.matmul %72, %73, %cst_28 {dimension_numbers = #tpu.dot_dimension_numbers<[1], [0], [0], [1], [0, 0, 1, 1], [], []>} : vector<16x32xf32>, vector<32x10xf32>, vector<16x10xf32> -> vector<16x10xf32>
    %75 = vector.extract_strided_slice %74 {offsets = [0, 0], sizes = [16, 8], strides = [1, 1]} : vector<16x10xf32> to vector<16x8xf32>
    %76 = vector.extract_strided_slice %74 {offsets = [0, 8], sizes = [16, 1], strides = [1, 1]} : vector<16x10xf32> to vector<16x1xf32>
    %77 = vector.extract_strided_slice %74 {offsets = [0, 9], sizes = [16, 1], strides = [1, 1]} : vector<16x10xf32> to vector<16x1xf32>
    %78 = tpu.transpose %77, [1, 0] : vector<16x1xf32> -> vector<1x16xf32>
    %79 = vector.broadcast %76 : vector<16x1xf32> to vector<16x16xf32>
    %80 = vector.broadcast %78 : vector<1x16xf32> to vector<16x16xf32>
    %81 = arith.addf %79, %80 : vector<16x16xf32>
    %cst_29 = arith.constant 0.000000e+00 : f32
    %82 = vector.broadcast %cst_29 : f32 to vector<16x16xf32>
    %83 = arith.cmpf ogt, %81, %82 : vector<16x16xf32>
    %cst_30 = arith.constant 2.000000e-01 : f32
    %84 = vector.broadcast %cst_30 : f32 to vector<16x16xf32>
    %85 = arith.mulf %84, %81 : vector<16x16xf32>
    %86 = arith.select %83, %81, %85 : vector<16x16xi1>, vector<16x16xf32>
    %cst_31 = arith.constant -9.000000e+15 : f32
    %87 = vector.broadcast %cst_31 : f32 to vector<16x16xf32>
    %88 = arith.select %3, %86, %87 : vector<16x16xi1>, vector<16x16xf32>
    %cst_32 = arith.constant dense<0xFF800000> : vector<16xf32>
    %89 = vector.multi_reduction <maximumf>, %88, %cst_32 [1] : vector<16x16xf32> to vector<16xf32>
    %90 = vector.shape_cast %89 : vector<16xf32> to vector<16x1xf32>
    %91 = vector.broadcast %90 : vector<16x1xf32> to vector<16x16xf32>
    %92 = arith.subf %88, %91 : vector<16x16xf32>
    %93 = math.exp %92 : vector<16x16xf32>
    %cst_33 = arith.constant dense<0.000000e+00> : vector<16xf32>
    %94 = vector.multi_reduction <add>, %93, %cst_33 [1] : vector<16x16xf32> to vector<16xf32>
    %95 = vector.shape_cast %94 : vector<16xf32> to vector<16x1xf32>
    %cst_34 = arith.constant dense<0.000000e+00> : vector<16x8xf32>
    %96 = tpu.matmul %93, %75, %cst_34 {dimension_numbers = #tpu.dot_dimension_numbers<[1], [0], [0], [1], [0, 0, 1, 1], [], []>} : vector<16x16xf32>, vector<16x8xf32>, vector<16x8xf32> -> vector<16x8xf32>
    %97 = tpu.reciprocal %95 : vector<16x1xf32> -> vector<16x1xf32>
    %98 = vector.broadcast %97 : vector<16x1xf32> to vector<16x8xf32>
    %99 = arith.mulf %96, %98 : vector<16x8xf32>
    %cst_35 = arith.constant 0.000000e+00 : f32
    %100 = vector.broadcast %cst_35 : f32 to vector<16x8xf32>
    %101 = arith.cmpf ogt, %99, %100 : vector<16x8xf32>
    %102 = math.exp %99 : vector<16x8xf32>
    %cst_36 = arith.constant 1.000000e+00 : f32
    %103 = vector.broadcast %cst_36 : f32 to vector<16x8xf32>
    %104 = arith.subf %102, %103 : vector<16x8xf32>
    %105 = arith.select %101, %99, %104 : vector<16x8xi1>, vector<16x8xf32>
    %cst_37 = arith.constant dense<0xFF800000> : vector<16xf32>
    %106 = vector.multi_reduction <maximumf>, %105, %cst_37 [1] : vector<16x8xf32> to vector<16xf32>
    %107 = vector.shape_cast %106 : vector<16xf32> to vector<16x1xf32>
    %108 = vector.broadcast %107 : vector<16x1xf32> to vector<16x8xf32>
    %109 = arith.subf %105, %108 : vector<16x8xf32>
    %110 = math.exp %109 : vector<16x8xf32>
    %cst_38 = arith.constant dense<0.000000e+00> : vector<16xf32>
    %111 = vector.multi_reduction <add>, %110, %cst_38 [1] : vector<16x8xf32> to vector<16xf32>
    %112 = vector.shape_cast %111 : vector<16xf32> to vector<16x1xf32>
    %113 = math.log %112 : vector<16x1xf32>
    %114 = arith.addf %107, %113 : vector<16x1xf32>
    %115 = vector.broadcast %114 : vector<16x1xf32> to vector<16x8xf32>
    %116 = arith.subf %105, %115 : vector<16x8xf32>
    %c0_39 = arith.constant 0 : index
    %c0_40 = arith.constant 0 : index
    %117 = vector.load %arg4[%c0_39, %c0_40] : memref<16x8xf32, #tpu.memory_space<vmem>>, vector<16x8xf32>
    tpu.vector_store %arg4[%c0_39, %c0_40], %116 {strides = array<i32>} : memref<16x8xf32, #tpu.memory_space<vmem>>, vector<16x8xf32>,
    return
  }
}

</mosaic_0001>

<bundles_post_ra>
// kernel: tpu_custom_call.1
= control target key start
LH: loop header
LB: loop body
LE: loop exit
PB: predicated region body
PF: predicated region fallthrough
CT: control target
= control target key end

     0   :  { %v680_v2 = vmov 16   ;;  %vm27_vm0 = vcmask 261120   ;;  %vm116_vm5 = vcmask 130048   ;;  %s814_s1 = inlined_call_operand.vmem [shape: f32[2,32,18], index: 1, kind: input, shape index: {}]   ;;  %s815_s0 = inlined_call_operand.vmem [shape: f32[16,32], index: 0, kind: input, shape index: {}]   ;;  %s816_s2 = inlined_call_operand.vmem [shape: f32[16,16], index: 2, kind: input, shape index: {}]   ;;  %s817_s3 = inlined_call_operand.vmem [shape: f32[32,10], index: 3, kind: input, shape index: {}]   ;;  %s818_s4 = inlined_call_operand.vmem [shape: f32[16,8], index: 4, kind: output, shape index: {}]  }
   0x1   :  { %v609_v0 = vld [vmem:[%s814_s1 + $0x38] sm:$0xff]  ;;  %v608_v1 = vld [vmem:[%s814_s1 + $0x30] sm:$0xff]  ;;  %632 = vset.pattern.permute.xlu1 %v680_v2  ;;  %v607_v3 = vld [vmem:[%s814_s1 + $0x28] sm:$0xff] }
   0x2   :  { %221 = vmatpush.msra.mxu2 %v609_v0  ;;  %v606_v4 = vld [vmem:[%s814_s1 + $0x20] sm:$0xff]  ;;  %v18_v6 = vld [vmem:[%s815_s0 + $0x8] sm:$0xff]  ;;  %v26_v7 = vld [vmem:[%s814_s1 + $0x18] sm:$0xff] }
   0x3   :  { %v17_v5 = vld [vmem:[%s815_s0] sm:$0xff]  ;;  %46 = vmatpush.msra.mxu0 %v26_v7  ;;  %v25_v8 = vld [vmem:[%s814_s1 + $0x10] sm:$0xff]  ;;  %v24_v9 = vld [vmem:[%s814_s1 + $0x8] sm:$0xff]  ;;  %s681_s0 = smov 111  }
   0x4   :  { %222 = vmatpush.msra.mxu2 %v608_v1  ;;  %v23_v10 = vld [vmem:[%s814_s1] sm:$0xff]  ;;  %v752_v21 = vld [vmem:[%s816_s2 + $0x8] sm:$0xff] }
   0x5   :  { %47 = vmatpush.msra.mxu0 %v25_v8  ;;  %v747_v20 = vld [vmem:[%s816_s2] sm:$0xff]  ;;  %vm22_vm2 = vcmp.gt.f32.partialorder %v752_v21, 0.0  ;;  %s682_s2 = smov 16  }
   0x6   :  { %223 = vmatpush.msra.mxu2 %v607_v3  ;;  %vm21_vm1 = vcmp.gt.f32.partialorder %v747_v20, 0.0 }
   0x7   :  { %48 = vmatpush.msra.mxu0 %v24_v9 }
   0x8   :  { %224 = vmatpush.msra.mxu2 %v606_v4 }
   0x9   :  { %610 = vmatmul.msk.f32.vlgmr.msra.gmra.mxu2 %vm27_vm0, %v17_v5  ;;  %49 = vmatpush.msra.mxu0 %v23_v10 }
   0xa   :  { %600 = vmatmul.msk.f32.vlgmr.msra.gmra.mxu0 %vm27_vm0, %v17_v5 }
  0x11   :  { %611 = vmatmul.msk.f32.gmra.mxu2 %vm27_vm0, %v18_v6 }
  0x12   :  { %601 = vmatmul.msk.f32.gmra.mxu0 %vm27_vm0, %v18_v6 }
  0x87   :  { %v51_v13 = vpop.f32.mrf.mxu0 }
  0x8c   :  { %v226_v11 = vpop.f32.mrf.mxu2 }
  0x8d   :  { %273 = vperm.xlu1 %632, %v226_v11   ;;  %234 = vrot.lane.b32.xlu0 %v226_v11, %s681_s0 }
  0x8f   :  { %v54_v15 = vpop.f32.mrf.mxu0 }
  0x90   :  { %155 = vmatpush.msrb.mxu0 %v54_v15  ;;  %622 = vmatpush.msra.mxu1 %v54_v15 }
  0x92   :  { %156 = vmatpush.msrb.mxu0 %v51_v13  ;;  %623 = vmatpush.msra.mxu1 %v51_v13 }
  0x94   :  { %v229_v12 = vpop.f32.mrf.mxu2 }
  0x95   :  { %277 = vperm.xlu1 %632, %v229_v12   ;;  %236 = vrot.lane.b32.xlu0 %v229_v12, %s681_s0 }
  0x96   :  { %329 = vmatpush.msrb.mxu2 %v229_v12  ;;  %624 = vmatpush.msra.mxu3 %v229_v12 }
  0x98   :  { %330 = vmatpush.msrb.mxu2 %v226_v11  ;;  %625 = vmatpush.msra.mxu3 %v226_v11 }
  0x9d   :  { %59 = vrot.lane.b32.xlu0 %v51_v13, %s681_s0  ;;  %61 = vrot.lane.b32.xlu1 %v54_v15, %s681_s0 }
  0xa5   :  { %102 = vperm.xlu1 %632, %v54_v15  }
  0xff   :  { %v235_v14 = vpop.permute.xlu0 %234  ;;  %v274_v17 = vpop.permute.xlu1 %273 }
 0x100   :  { %240 = vxpose.xlu2.b32.start [1/2] (short) (narrow) %v235_v14, 8 }
 0x107   :  { %v237_v16 = vpop.permute.xlu0 %236  ;;  %v278_v22 = vpop.permute.xlu1 %277 }
 0x108   :  { %241 = vxpose.xlu2.b32.end [2/2] (short) (narrow) %v237_v16, 8 }
 0x10f   :  { %v60_v33 = vpop.permute.xlu0 %59  ;;  %v62_v34 = vpop.permute.xlu1 %61 }
 0x117   :  { %v103_v35 = vpop.permute.xlu1 %102 }
 0x16a   :  { %633 = vset.pattern.permute.xlu2 %v680_v2 }
 0x171   :  { %98 = vperm.xlu2 %633, %v51_v13  }
 0x199   :  { %v256_v18 = vpop.trf.xlu2 }
 0x19a   :  { %v280_v19 = vperm.slane %v256_v18, 0 }
 0x19c   :  { %v281_v23 = vadd.f32 %v280_v19, %v274_v17  ;;  %v282_v24 = vadd.f32 %v280_v19, %v278_v22 }
 0x19e   :  { %vm283_vm3 = vcmp.gt.f32.partialorder %v281_v23, 0.0  ;;  %v285_v25 = vmul.f32 0.2, %v281_v23  ;;  %vm284_vm4 = vcmp.gt.f32.partialorder %v282_v24, 0.0  ;;  %v286_v26 = vmul.f32 0.2, %v282_v24 }
 0x1a0   :  { %v287_v27 = vsel %vm283_vm3, %v281_v23, %v285_v25  ;;  %v288_v28 = vsel %vm284_vm4, %v282_v24, %v286_v26 }
 0x1a1   :  { %v289_v29 = vsel %vm21_vm1, %v287_v27, -9e+15  ;;  %v290_v30 = vsel %vm22_vm2, %v288_v28, -9e+15 }
 0x1a2   :  { %v291_v31 = vsel %vm116_vm5, %v289_v29, -inf  ;;  %v294_v32 = vsel %vm116_vm5, %v290_v30, -inf }
 0x1a3   :  { %292 = vmax.xlane.f32.xlu0 %v291_v31  ;;  %295 = vmax.xlane.f32.xlu1 %v294_v32 }
 0x1cb   :  { %v99_v46 = vpop.permute.xlu2 %98 }
 0x1cc   :  { %65 = vxpose.xlu0.b32.start [1/2] (short) (narrow) %v60_v33, 8 }
 0x1d4   :  { %66 = vxpose.xlu0.b32.end [2/2] (short) (narrow) %v62_v34, 8 }
 0x216   :  { %v293_v36 = vpop.xlane.xlu0 %292  ;;  %v296_v37 = vpop.xlane.xlu1 %295 }
 0x217   :  { %v297_v38 = vsub.f32 %v289_v29, %v293_v36  ;;  %v298_v39 = vsub.f32 %v290_v30, %v296_v37 }
 0x219   :  { %v299_v40 = vmul.f32 1.442695, %v297_v38  ;;  %v301_v41 = vmul.f32 1.442695, %v298_v39 }
 0x21b   :  { %636 = vpow2.f32 %v299_v40 }
 0x21c   :  { %638 = vpow2.f32 %v301_v41  ;;  %v391_v41 = vld [vmem:[%s817_s3 + $0x18] sm:$0xff] }
 0x21d   :  { %410 = vmatpush.msrb.mxu1 %v391_v41 }
 0x221   :  { %v637_v42 = vpop.eup %636 }
 0x222   :  { %v639_v43 = vpop.eup %638  ;;  %612 = vmatmul.msk.f32.vlgmr.msrb.gmra.mxu2 %vm116_vm5, %v637_v42  ;;  %v303_v57 = vsel %vm116_vm5, %v637_v42, 0.0  ;;  %v390_v42 = vld [vmem:[%s817_s3 + $0x10] sm:$0xff] }
 0x223   :  { %613 = vmatmul.msk.f32.vlgmr.msra.gmra.mxu3 %vm116_vm5, %v639_v43  ;;  %v306_v58 = vsel %vm116_vm5, %v639_v43, 0.0  ;;  %411 = vmatpush.msrb.mxu1 %v390_v42 }
 0x270   :  { %v81_v44 = vpop.trf.xlu0 }
 0x271   :  { %v105_v45 = vperm.slane %v81_v44, 0  ;;  %v389_v44 = vld [vmem:[%s817_s3 + $0x8] sm:$0xff] }
 0x272   :  { %412 = vmatpush.msrb.mxu1 %v389_v44 }
 0x273   :  { %v106_v47 = vadd.f32 %v105_v45, %v99_v46  ;;  %v107_v48 = vadd.f32 %v105_v45, %v103_v35  ;;  %v388_v45 = vld [vmem:[%s817_s3] sm:$0xff]  ;;  %s684_s3 = smov 119  }
 0x274   :  { %413 = vmatpush.msrb.mxu1 %v388_v45 }
 0x275   :  { %vm108_vm6 = vcmp.gt.f32.partialorder %v106_v47, 0.0  ;;  %v110_v49 = vmul.f32 0.2, %v106_v47  ;;  %v111_v51 = vmul.f32 0.2, %v107_v48  ;;  %vm109_vm7 = vcmp.gt.f32.partialorder %v107_v48, 0.0 }
 0x277   :  { %v112_v50 = vsel %vm108_vm6, %v106_v47, %v110_v49  ;;  %v113_v54 = vsel %vm109_vm7, %v107_v48, %v111_v51 }
 0x278   :  { %v114_v52 = vsel %vm21_vm1, %v112_v50, -9e+15  ;;  %v115_v55 = vsel %vm22_vm2, %v113_v54, -9e+15 }
 0x279   :  { %v117_v53 = vsel %vm116_vm5, %v114_v52, -inf  ;;  %v120_v56 = vsel %vm116_vm5, %v115_v55, -inf }
 0x27a   :  { %118 = vmax.xlane.f32.xlu1 %v117_v53 }
 0x282   :  { %121 = vmax.xlane.f32.xlu1 %v120_v56 }
 0x28a   :  { %304 = vadd.xlane.f32.xlu1 %v303_v57 }
 0x292   :  { %307 = vadd.xlane.f32.xlu1 %v306_v58 }
 0x2a5   :  { %v332_v18 = vpop.f32.mrf.mxu2 }
 0x2a6   :  { %v335_v31 = vpop.f32.mrf.mxu3 }
 0x2ed   :  { %v119_v59 = vpop.xlane.xlu1 %118 }
 0x2ee   :  { %v123_v60 = vsub.f32 %v114_v52, %v119_v59 }
 0x2f0   :  { %v125_v61 = vmul.f32 1.442695, %v123_v60 }
 0x2f2   :  { %640 = vpow2.f32 %v125_v61 }
 0x2f5   :  { %v122_v62 = vpop.xlane.xlu1 %121 }
 0x2f6   :  { %v124_v63 = vsub.f32 %v115_v55, %v122_v62 }
 0x2f8   :  { %v641_v0 = vpop.eup %640  ;;  %v127_v1 = vmul.f32 1.442695, %v124_v63 }
 0x2f9   :  { %602 = vmatmul.msk.f32.vlgmr.msrb.gmra.mxu0 %vm116_vm5, %v641_v0  ;;  %v129_v2 = vsel %vm116_vm5, %v641_v0, 0.0 }
 0x2fa   :  { %642 = vpow2.f32 %v127_v1  ;;  %130 = vadd.xlane.f32.xlu1 %v129_v2 }
 0x2fd   :  { %v305_v3 = vpop.xlane.xlu1 %304 }
 0x2fe   :  { %644 = vrcp.f32 %v305_v3  ;;  %v349_v10 = vand.u32 2147483648, %v305_v3  ;;  %v347_v12 = vand.u32 2147483647, %v305_v3  ;;  %vm343_vm9 = vweird.f32 %v305_v3 }
 0x300   :  { %v643_v4 = vpop.eup %642  ;;  %v350_v15 = vor.u32 1.1754944e-38, %v349_v10  ;;  %vm348_vm11 = vcmp.eq.f32.partialorder %v347_v12, 8.507059e+37 }
 0x301   :  { %603 = vmatmul.msk.f32.vlgmr.msra.gmra.mxu1 %vm116_vm5, %v643_v4  ;;  %v132_v5 = vsel %vm116_vm5, %v643_v4, 0.0 }
 0x302   :  { %133 = vadd.xlane.f32.xlu1 %v132_v5 }
 0x304   :  { %v645_v6 = vpop.eup %644 }
 0x305   :  { %v339_v7 = vmul.f32 %v645_v6, %v305_v3  ;;  %v308_v8 = vpop.xlane.xlu1 %307  ;;  %vm344_vm8 = vweird.f32 %v645_v6 }
 0x306   :  { %646 = vrcp.f32 %v308_v8  ;;  %vm345_vm10 = vmor %vm343_vm9, %vm344_vm8  ;;  %v363_v24 = vand.u32 2147483648, %v308_v8  ;;  %v361_v26 = vand.u32 2147483647, %v308_v8  ;;  %vm357_vm13 = vweird.f32 %v308_v8 }
 0x307   :  { %v340_v9 = vsub.f32 1.0, %v339_v7 }
 0x308   :  { %v364_v29 = vor.u32 1.1754944e-38, %v363_v24  ;;  %vm362_vm15 = vcmp.eq.f32.partialorder %v361_v26, 8.507059e+37 }
 0x309   :  { %v341_v11 = vmul.f32 %v645_v6, %v340_v9 }
 0x30b   :  { %v342_v13 = vadd.f32 %v645_v6, %v341_v11 }
 0x30c   :  { %v647_v14 = vpop.eup %646 }
 0x30d   :  { %v353_v16 = vmul.f32 %v647_v14, %v308_v8  ;;  %v346_v17 = vsel %vm345_vm10, %v645_v6, %v342_v13  ;;  %vm358_vm12 = vweird.f32 %v647_v14 }
 0x30e   :  { %v351_v19 = vsel %vm348_vm11, %v350_v15, %v346_v17  ;;  %vm359_vm14 = vmor %vm357_vm13, %vm358_vm12 }
 0x30f   :  { %v354_v22 = vsub.f32 1.0, %v353_v16  ;;  %v366_v23 = vmul.f32 %v351_v19, %v332_v18  ;;  %v683_v19 = vmov 8  }
 0x310   :  { %634 = vset.pattern.permute.xlu2 %v683_v19  ;;  %635 = vset.pattern.permute.xlu0 %v683_v19 }
 0x311   :  { %v355_v25 = vmul.f32 %v647_v14, %v354_v22  ;;  %v370_v27 = vmul.f32 1.442695, %v366_v23  ;;  %vm368_vm3 = vcmp.gt.f32.partialorder %v366_v23, 0.0 }
 0x313   :  { %v356_v28 = vadd.f32 %v647_v14, %v355_v25  ;;  %648 = vpow2.f32 %v370_v27 }
 0x315   :  { %v360_v30 = vsel %vm359_vm14, %v647_v14, %v356_v28 }
 0x316   :  { %v365_v32 = vsel %vm362_vm15, %v364_v29, %v360_v30 }
 0x317   :  { %v367_v33 = vmul.f32 %v365_v32, %v335_v31 }
 0x319   :  { %v649_v34 = vpop.eup %648  ;;  %v372_v35 = vmul.f32 1.442695, %v367_v33  ;;  %vm369_vm4 = vcmp.gt.f32.partialorder %v367_v33, 0.0 }
 0x31a   :  { %v614_v36 = vadd.f32 -1.0, %v649_v34 }
 0x31b   :  { %650 = vpow2.f32 %v372_v35 }
 0x31c   :  { %v376_v37 = vsel %vm368_vm3, %v366_v23, %v614_v36 }
 0x31d   :  { %380 = vrot.lane.b32.xlu0 %v376_v37, %s682_s2 }
 0x321   :  { %v651_v38 = vpop.eup %650 }
 0x322   :  { %v615_v39 = vadd.f32 -1.0, %v651_v38 }
 0x324   :  { %v377_v40 = vsel %vm369_vm4, %v367_v33, %v615_v39 }
 0x325   :  { %382 = vrot.lane.b32.xlu2 %v377_v40, %s682_s2 }
 0x36d   :  { %v131_v43 = vpop.xlane.xlu1 %130 }
 0x36e   :  { %652 = vrcp.f32 %v131_v43  ;;  %v175_v50 = vand.u32 2147483648, %v131_v43  ;;  %v173_v52 = vand.u32 2147483647, %v131_v43  ;;  %vm169_vm7 = vweird.f32 %v131_v43 }
 0x370   :  { %v176_v55 = vor.u32 1.1754944e-38, %v175_v50  ;;  %vm174_vm9 = vcmp.eq.f32.partialorder %v173_v52, 8.507059e+37 }
 0x374   :  { %v653_v46 = vpop.eup %652 }
 0x375   :  { %v165_v47 = vmul.f32 %v653_v46, %v131_v43  ;;  %v134_v48 = vpop.xlane.xlu1 %133  ;;  %vm170_vm6 = vweird.f32 %v653_v46 }
 0x376   :  { %654 = vrcp.f32 %v134_v48  ;;  %vm171_vm8 = vmor %vm169_vm7, %vm170_vm6  ;;  %v158_v58 = vpop.f32.mrf.mxu0  ;;  %v189_v62 = vand.u32 2147483648, %v134_v48  ;;  %v187_v1 = vand.u32 2147483647, %v134_v48  ;;  %vm183_vm11 = vweird.f32 %v134_v48 }
 0x377   :  { %v166_v49 = vsub.f32 1.0, %v165_v47 }
 0x378   :  { %v190_v3 = vor.u32 1.1754944e-38, %v189_v62  ;;  %vm188_vm13 = vcmp.eq.f32.partialorder %v187_v1, 8.507059e+37 }
 0x379   :  { %v167_v51 = vmul.f32 %v653_v46, %v166_v49 }
 0x37b   :  { %v168_v53 = vadd.f32 %v653_v46, %v167_v51 }
 0x37c   :  { %v655_v54 = vpop.eup %654 }
 0x37d   :  { %v179_v56 = vmul.f32 %v655_v54, %v134_v48  ;;  %v172_v57 = vsel %vm171_vm8, %v653_v46, %v168_v53  ;;  %vm184_vm10 = vweird.f32 %v655_v54 }
 0x37e   :  { %v177_v59 = vsel %vm174_vm9, %v176_v55, %v172_v57  ;;  %vm185_vm12 = vmor %vm183_vm11, %vm184_vm10  ;;  %v161_v5 = vpop.f32.mrf.mxu1  ;;  %vm567_vm10 = vcmask 64512  }
 0x37f   :  { %v180_v60 = vsub.f32 1.0, %v179_v56  ;;  %v192_v61 = vmul.f32 %v177_v59, %v158_v58  ;;  %v383_v17 = vpop.permute.xlu2 %382 }
 0x381   :  { %v196_v63 = vmul.f32 1.442695, %v192_v61  ;;  %v181_v0 = vmul.f32 %v655_v54, %v180_v60  ;;  %vm194_vm14 = vcmp.gt.f32.partialorder %v192_v61, 0.0 }
 0x383   :  { %656 = vpow2.f32 %v196_v63  ;;  %v182_v2 = vadd.f32 %v655_v54, %v181_v0 }
 0x385   :  { %v186_v4 = vsel %vm185_vm12, %v655_v54, %v182_v2 }
 0x386   :  { %v191_v6 = vsel %vm188_vm13, %v190_v3, %v186_v4 }
 0x387   :  { %v193_v7 = vmul.f32 %v191_v6, %v161_v5 }
 0x389   :  { %v657_v8 = vpop.eup %656  ;;  %v198_v9 = vmul.f32 1.442695, %v193_v7  ;;  %vm195_vm15 = vcmp.gt.f32.partialorder %v193_v7, 0.0 }
 0x38a   :  { %v604_v10 = vadd.f32 -1.0, %v657_v8 }
 0x38b   :  { %658 = vpow2.f32 %v198_v9 }
 0x38c   :  { %v202_v12 = vsel %vm194_vm14, %v192_v61, %v604_v10 }
 0x38f   :  { %v381_v11 = vpop.permute.xlu0 %380 }
 0x390   :  { %v386_v13 = vsel %vm116_vm5, %v202_v12, %v381_v11 }
 0x391   :  { %v659_v14 = vpop.eup %658  ;;  %616 = vmatmul.msk.f32.vlgmr.msrb.gmra.mxu1 %vm27_vm0, %v386_v13 }
 0x392   :  { %v605_v15 = vadd.f32 -1.0, %v659_v14 }
 0x394   :  { %v203_v16 = vsel %vm195_vm15, %v193_v7, %v605_v15 }
 0x395   :  { %v387_v18 = vsel %vm116_vm5, %v203_v16, %v383_v17 }
 0x399   :  { %617 = vmatmul.msk.f32.gmra.mxu1 %vm27_vm0, %v387_v18 }
 0x40e   :  { %v415_v22 = vpop.f32.mrf.mxu1 }
 0x40f   :  { %423 = vrot.lane.b32.xlu1 %v415_v22, %s684_s3 }
 0x416   :  { %v418_v23 = vpop.f32.mrf.mxu1 }
 0x417   :  { %425 = vrot.lane.b32.xlu2 %v418_v23, %s684_s3  ;;  %518 = vmatpush.msrb.mxu3 %v418_v23 }
 0x419   :  { %519 = vmatpush.msrb.mxu3 %v415_v22 }
 0x41f   :  { %462 = vperm.xlu2 %634, %v415_v22  }
 0x427   :  { %466 = vperm.xlu2 %634, %v418_v23  }
 0x471   :  { %v426_v25 = vpop.permute.xlu2 %425 }
 0x479   :  { %v463_v26 = vpop.permute.xlu2 %462 }
 0x481   :  { %v424_v24 = vpop.permute.xlu1 %423  ;;  %v467_v29 = vpop.permute.xlu2 %466 }
 0x482   :  { %429 = vxpose.xlu1.b32.start [1/2] (short) (narrow) %v424_v24, 8 }
 0x48a   :  { %430 = vxpose.xlu1.b32.end [2/2] (short) (narrow) %v426_v25, 8 }
 0x526   :  { %v445_v27 = vpop.trf.xlu1 }
 0x527   :  { %v469_v28 = vperm.slane %v445_v27, 0 }
 0x529   :  { %v470_v30 = vadd.f32 %v469_v28, %v463_v26  ;;  %v471_v31 = vadd.f32 %v469_v28, %v467_v29 }
 0x52b   :  { %vm472_vm0 = vcmp.gt.f32.partialorder %v470_v30, 0.0  ;;  %v474_v32 = vmul.f32 0.2, %v470_v30  ;;  %v475_v34 = vmul.f32 0.2, %v471_v31  ;;  %vm473_vm3 = vcmp.gt.f32.partialorder %v471_v31, 0.0 }
 0x52d   :  { %v476_v33 = vsel %vm472_vm0, %v470_v30, %v474_v32  ;;  %v477_v37 = vsel %vm473_vm3, %v471_v31, %v475_v34 }
 0x52e   :  { %v478_v35 = vsel %vm21_vm1, %v476_v33, -9e+15  ;;  %v479_v38 = vsel %vm22_vm2, %v477_v37, -9e+15 }
 0x52f   :  { %v480_v36 = vsel %vm116_vm5, %v478_v35, -inf  ;;  %v483_v39 = vsel %vm116_vm5, %v479_v38, -inf }
 0x530   :  { %481 = vmax.xlane.f32.xlu2 %v480_v36 }
 0x538   :  { %484 = vmax.xlane.f32.xlu2 %v483_v39 }
 0x5a3   :  { %v482_v40 = vpop.xlane.xlu2 %481 }
 0x5a4   :  { %v486_v41 = vsub.f32 %v478_v35, %v482_v40 }
 0x5a6   :  { %v488_v42 = vmul.f32 1.442695, %v486_v41 }
 0x5a8   :  { %660 = vpow2.f32 %v488_v42 }
 0x5ab   :  { %v485_v43 = vpop.xlane.xlu2 %484 }
 0x5ac   :  { %v487_v44 = vsub.f32 %v479_v38, %v485_v43 }
 0x5ae   :  { %v661_v45 = vpop.eup %660  ;;  %v490_v20 = vmul.f32 1.442695, %v487_v44 }
 0x5af   :  { %618 = vmatmul.msk.f32.vlgmr.msrb.gmra.mxu3 %vm116_vm5, %v661_v45  ;;  %v492_v46 = vsel %vm116_vm5, %v661_v45, 0.0 }
 0x5b0   :  { %662 = vpow2.f32 %v490_v20  ;;  %493 = vadd.xlane.f32.xlu2 %v492_v46 }
 0x5b6   :  { %v663_v47 = vpop.eup %662 }
 0x5b7   :  { %619 = vmatmul.msk.f32.gmra.mxu3 %vm116_vm5, %v663_v47  ;;  %v495_v21 = vsel %vm116_vm5, %v663_v47, 0.0 }
 0x5b8   :  { %496 = vadd.xlane.f32.xlu1 %v495_v21 }
 0x623   :  { %v494_v48 = vpop.xlane.xlu2 %493 }
 0x624   :  { %664 = vrcp.f32 %v494_v48  ;;  %v538_v53 = vand.u32 2147483648, %v494_v48  ;;  %v536_v55 = vand.u32 2147483647, %v494_v48  ;;  %vm532_vm2 = vweird.f32 %v494_v48 }
 0x626   :  { %v539_v59 = vor.u32 1.1754944e-38, %v538_v53  ;;  %vm537_vm5 = vcmp.eq.f32.partialorder %v536_v55, 8.507059e+37 }
 0x62a   :  { %v665_v49 = vpop.eup %664 }
 0x62b   :  { %v528_v50 = vmul.f32 %v665_v49, %v494_v48  ;;  %v497_v51 = vpop.xlane.xlu1 %496  ;;  %vm533_vm1 = vweird.f32 %v665_v49 }
 0x62c   :  { %666 = vrcp.f32 %v497_v51  ;;  %vm534_vm4 = vmor %vm532_vm2, %vm533_vm1  ;;  %v552_v1 = vand.u32 2147483648, %v497_v51  ;;  %v550_v4 = vand.u32 2147483647, %v497_v51  ;;  %vm546_vm7 = vweird.f32 %v497_v51 }
 0x62d   :  { %v529_v52 = vsub.f32 1.0, %v528_v50 }
 0x62e   :  { %v553_v6 = vor.u32 1.1754944e-38, %v552_v1  ;;  %vm551_vm9 = vcmp.eq.f32.partialorder %v550_v4, 8.507059e+37 }
 0x62f   :  { %v530_v54 = vmul.f32 %v665_v49, %v529_v52 }
 0x631   :  { %v531_v56 = vadd.f32 %v665_v49, %v530_v54 }
 0x632   :  { %v667_v57 = vpop.eup %666  ;;  %v521_v58 = vpop.f32.mrf.mxu3 }
 0x633   :  { %v542_v60 = vmul.f32 %v667_v57, %v497_v51  ;;  %v535_v61 = vsel %vm534_vm4, %v665_v49, %v531_v56  ;;  %vm547_vm6 = vweird.f32 %v667_v57 }
 0x634   :  { %v540_v62 = vsel %vm537_vm5, %v539_v59, %v535_v61  ;;  %vm548_vm8 = vmor %vm546_vm7, %vm547_vm6 }
 0x635   :  { %v543_v63 = vsub.f32 1.0, %v542_v60  ;;  %v555_v0 = vmul.f32 %v540_v62, %v521_v58 }
 0x637   :  { %v544_v2 = vmul.f32 %v667_v57, %v543_v63  ;;  %v559_v3 = vmul.f32 1.442695, %v555_v0  ;;  %vm557_vm11 = vcmp.gt.f32.partialorder %v555_v0, 0.0 }
 0x639   :  { %668 = vpow2.f32 %v559_v3  ;;  %v545_v5 = vadd.f32 %v667_v57, %v544_v2 }
 0x63a   :  { %v524_v8 = vpop.f32.mrf.mxu3 }
 0x63b   :  { %v549_v7 = vsel %vm548_vm8, %v667_v57, %v545_v5 }
 0x63c   :  { %v554_v9 = vsel %vm551_vm9, %v553_v6, %v549_v7 }
 0x63d   :  { %v556_v10 = vmul.f32 %v554_v9, %v524_v8 }
 0x63f   :  { %v669_v11 = vpop.eup %668  ;;  %v561_v12 = vmul.f32 1.442695, %v556_v10  ;;  %vm558_vm12 = vcmp.gt.f32.partialorder %v556_v10, 0.0 }
 0x640   :  { %v620_v13 = vadd.f32 -1.0, %v669_v11 }
 0x641   :  { %670 = vpow2.f32 %v561_v12 }
 0x642   :  { %v565_v14 = vsel %vm557_vm11, %v555_v0, %v620_v13 }
 0x643   :  { %v568_v15 = vsel %vm567_vm10, %v565_v14, -inf }
 0x644   :  { %569 = vmax.xlane.f32.xlu2 %v568_v15 }
 0x647   :  { %v671_v16 = vpop.eup %670 }
 0x648   :  { %v621_v17 = vadd.f32 -1.0, %v671_v16 }
 0x64a   :  { %v566_v18 = vsel %vm558_vm12, %v556_v10, %v621_v17 }
 0x64b   :  { %v571_v19 = vsel %vm567_vm10, %v566_v18, -inf }
 0x64c   :  { %572 = vmax.xlane.f32.xlu2 %v571_v19 }
 0x6b7   :  { %v570_v22 = vpop.xlane.xlu2 %569 }
 0x6b8   :  { %v574_v23 = vsub.f32 %v565_v14, %v570_v22 }
 0x6ba   :  { %v576_v24 = vmul.f32 1.442695, %v574_v23 }
 0x6bc   :  { %672 = vpow2.f32 %v576_v24 }
 0x6bf   :  { %v573_v25 = vpop.xlane.xlu2 %572 }
 0x6c0   :  { %v575_v26 = vsub.f32 %v566_v18, %v573_v25 }
 0x6c2   :  { %v673_v27 = vpop.eup %672  ;;  %v578_v28 = vmul.f32 1.442695, %v575_v26 }
 0x6c3   :  { %v580_v29 = vsel %vm567_vm10, %v673_v27, 0.0 }
 0x6c4   :  { %674 = vpow2.f32 %v578_v28  ;;  %581 = vadd.xlane.f32.xlu0 %v580_v29 }
 0x6ca   :  { %v675_v30 = vpop.eup %674 }
 0x6cb   :  { %v583_v31 = vsel %vm567_vm10, %v675_v30, 0.0 }
 0x6cc   :  { %584 = vadd.xlane.f32.xlu2 %v583_v31 }
 0x737   :  { %v582_v32 = vpop.xlane.xlu0 %581 }
 0x738   :  { %676 = vlog2.f32 %v582_v32 }
 0x73e   :  { %v677_v33 = vpop.eup %676 }
 0x73f   :  { %v587_v34 = vmul.f32 0.6931472, %v677_v33  ;;  %v585_v35 = vpop.xlane.xlu2 %584 }
 0x740   :  { %678 = vlog2.f32 %v585_v35 }
 0x741   :  { %v590_v36 = vadd.f32 %v587_v34, %v570_v22 }
 0x743   :  { %v592_v37 = vsub.f32 %v565_v14, %v590_v36 }
 0x745   :  { %594 = vst.msk [vmem:[%s818_s4] sm:$0xff] %vm567_vm10, %v592_v37 }
 0x746   :  { %v679_v38 = vpop.eup %678 }
 0x747   :  { %v589_v39 = vmul.f32 0.6931472, %v679_v38 }
 0x749   :  { %v591_v40 = vadd.f32 %v589_v39, %v573_v25 }
 0x74b   :  { %v593_v41 = vsub.f32 %v566_v18, %v591_v40 }
 0x74d   :  { %595 = vst.msk [vmem:[%s818_s4 + $0x8] sm:$0xff] %vm567_vm10, %v593_v41 }

</bundles_post_ra>
